<compile_context>
chip_gen: v7x
topology: tpu7x:2x2x1
jax: 0.10.0
libtpu: 0.0.40
codegen_flags: <defaults>
</compile_context>

<pallas_src>
import functools
import math

import jax
import jax.numpy as jnp
from jax.experimental import pallas as pl
from jax.experimental.pallas import tpu as pltpu


def _round_up(x, m):
    return ((x + m - 1) // m) * m


# ---------------------------------------------------------------------------
# Fused MLP kernel: the whole Linear->ReLU->...->Linear[->Tanh] stack runs in
# one grid step; intermediates never leave vregs/VMEM.
# ---------------------------------------------------------------------------
def _fused_mlp_kernel(*refs, num_layers, output_activation):
    # refs = (x_ref, w0_ref, b0_ref, ..., w{L-1}_ref, b{L-1}_ref, o_ref)
    x_ref = refs[0]
    o_ref = refs[-1]
    wb_refs = refs[1:-1]

    h = x_ref[...]                                   # (TB, D0), param dtype
    for i in range(num_layers):
        w = wb_refs[2 * i][...]                      # (D_in, D_out)
        b = wb_refs[2 * i + 1][...]                  # (1, D_out)
        acc = jnp.dot(h, w, preferred_element_type=jnp.float32)   # MXU, f32 acc
        acc = acc + b.astype(jnp.float32)            # f32 epilogue (VPU)
        if i < num_layers - 1:
            acc = jnp.maximum(acc, 0.0)              # ReLU (VPU)
            h = acc.astype(w.dtype)                  # param dtype for next MXU pass
        else:
            if output_activation == "tanh":
                acc = jnp.tanh(acc)                  # tanh on EUP, f32
            h = acc
    o_ref[...] = h.astype(o_ref.dtype)


# ---------------------------------------------------------------------------
# Parameter setup
# ---------------------------------------------------------------------------
def init_fc_params(key, dims):
    """PyTorch-style init: U(-1/sqrt(fan_in), 1/sqrt(fan_in)); weights stored
    in the PyTorch (out, in) convention (reference parameters)."""
    params = []
    for i in range(len(dims) - 1):
        fan_in, fan_out = dims[i], dims[i + 1]
        bound = 1.0 / math.sqrt(fan_in)
        key, kw, kb = jax.random.split(key, 3)
        w = jax.random.uniform(kw, (fan_out, fan_in), jnp.float32, -bound, bound)
        b = jax.random.uniform(kb, (fan_out,), jnp.float32, -bound, bound)
        params.append((w, b))
    return params


def prepare_fc_params(params, dtype=jnp.float32):
    """One-time prep: transpose to (D_in, D_out), bias -> (1, D_out).
    No padding: HBM traffic stays at useful bytes.  dtype=jnp.bfloat16 halves
    streamed/resident bytes (recommended for v6e/v7x); accumulation stays f32."""
    weights = [jnp.asarray(w.T, dtype) for w, _ in params]
    biases = [jnp.asarray(b.reshape(1, -1), dtype) for _, b in params]
    return {
        "weights": weights,
        "biases": biases,
        "in_dim": params[0][0].shape[1],
        "out_dim": params[-1][0].shape[0],
        "dtype": dtype,
    }


# ---------------------------------------------------------------------------
# Forward pass (single fused pallas_call)
# ---------------------------------------------------------------------------
def _choose_batch_tile(B, max_batch_tile):
    if B > max_batch_tile:
        return _round_up(max_batch_tile, 8)
    # Whole batch fits in one tile; split in two when there is enough work so
    # the "parallel" batch axis can shard across v7x's 2 TensorCores.
    if B >= 512 and B % 16 == 0:
        return B // 2
    return B


def fc_network_forward(x, prep, output_activation=None, max_batch_tile=512):
    assert output_activation in (None, "tanh"), (
        f"unsupported output_activation: {output_activation!r}")
    B, din = x.shape
    assert din == prep["in_dim"], "input feature dim mismatch"
    ws, bs = prep["weights"], prep["biases"]
    dtype = prep["dtype"]
    num_layers = len(ws)
    dout = prep["out_dim"]

    if x.dtype != dtype:
        x = x.astype(dtype)

    tb = _choose_batch_tile(B, max_batch_tile)
    grid_b = pl.cdiv(B, tb)
    bp = grid_b * tb
    if bp != B:
        # Ragged final batch tile: pad rows with zeros (sliced off below).
        # Padded rows pick up the biases through the net, which is harmless
        # because they are never read.
        # TODO(synk): mask the ragged tile in-kernel instead of materializing
        # a padded copy of x.
        x_in = jnp.zeros((bp, din), dtype).at[:B, :].set(x)
    else:
        x_in = x

    in_specs = [pl.BlockSpec((tb, din), lambda i: (i, 0))]
    inputs = [x_in]
    for w, b in zip(ws, bs):
        # Grid-invariant (constant block index) + single-buffered: parameters
        # are DMA'd once and stay resident in VMEM (1x footprint) while batch
        # tiles stream through double-buffered.
        in_specs.append(pl.BlockSpec(w.shape, lambda i: (0, 0),
                                     pipeline_mode=pl.Buffered(1)))
        in_specs.append(pl.BlockSpec(b.shape, lambda i: (0, 0),
                                     pipeline_mode=pl.Buffered(1)))
        inputs.append(w)
        inputs.append(b)
    out_specs = pl.BlockSpec((tb, dout), lambda i: (i, 0))

    # Explicit scoped-VMEM budget: resident params (single-buffered) +
    # double-buffered x/out batch tiles + f32 intermediates, with headroom.
    itemsize = jnp.dtype(dtype).itemsize
    param_bytes = (sum(w.size for w in ws) + sum(b.size for b in bs)) * itemsize
    max_feat = max([din, dout] + [w.shape[1] for w in ws])
    stream_bytes = 2 * tb * din * itemsize + 2 * tb * dout * 4
    interm_bytes = 4 * tb * max_feat * 4
    vmem_limit = min(
        max(2 * (param_bytes + stream_bytes + interm_bytes) + (4 << 20), 16 << 20),
        64 << 20)

    flops = 2 * B * sum(w.shape[0] * w.shape[1] for w in ws)
    transcendentals = B * dout if output_activation == "tanh" else 0
    bytes_accessed = int(x_in.size * itemsize + bp * dout * 4 + param_bytes)
    cost = pl.CostEstimate(flops=int(flops), transcendentals=int(transcendentals),
                           bytes_accessed=bytes_accessed)

    kernel = functools.partial(_fused_mlp_kernel, num_layers=num_layers,
                               output_activation=output_activation)

    y = pl.pallas_call(
        kernel,
        out_shape=jax.ShapeDtypeStruct((bp, dout), jnp.float32),
        grid=(grid_b,),
        in_specs=in_specs,
        out_specs=out_specs,
        compiler_params=pltpu.CompilerParams(
            dimension_semantics=("parallel",),
            vmem_limit_bytes=int(vmem_limit)),
        cost_estimate=cost,
    )(*inputs)

    if bp != B:
        y = y[:B]
    return y


# ---------------------------------------------------------------------------
# Pure-JAX reference (unpadded, PyTorch-convention params)
# ---------------------------------------------------------------------------
def fc_network_reference(x, params, output_activation=None):
    n = len(params)
    for i, (w, b) in enumerate(params):
        x = x @ w.T + b
        if i < n - 1:
            x = jnp.maximum(x, 0.0)
        elif output_activation == "tanh":
            x = jnp.tanh(x)
    return x


if __name__ == "__main__":
    key = jax.random.PRNGKey(0)

    # Small DDPG-actor-like MLP: obs_dim=16 -> 32 -> 32 -> act_dim=4, Tanh out.
    dims = (16, 32, 32, 4)
    output_activation = "tanh"  # analog of output_activation=torch.nn.Tanh

    key, kx, kxl = jax.random.split(key, 3)
    params = init_fc_params(key, dims)
    prep = prepare_fc_params(params)   # one-time transpose (f32; pass
                                       # dtype=jnp.bfloat16 for v6e/v7x)

    # Small batch: single tile, no padding, full-dim blocks.
    batch = 2
    x = jax.random.normal(kx, (batch, dims[0]), dtype=jnp.float32)
    out = jax.block_until_ready(fc_network_forward(x, prep, output_activation))
    ref = fc_network_reference(x, params, output_activation)
    assert out.shape == (batch, dims[-1])
    assert jnp.allclose(out, ref, atol=1e-5, rtol=1e-5), "mismatch vs reference (small)"

    # Larger batch: multi-tile grid + ragged final tile path.
    batch_l = 1000
    xl = jax.random.normal(kxl, (batch_l, dims[0]), dtype=jnp.float32)
    out_l = jax.block_until_ready(fc_network_forward(xl, prep, output_activation))
    ref_l = fc_network_reference(xl, params, output_activation)
    assert out_l.shape == (batch_l, dims[-1])
    assert jnp.allclose(out_l, ref_l, atol=1e-4, rtol=1e-4), "mismatch vs reference (large)"

    print("KERNEL_OK")
</pallas_src>

<mosaic_0001>
module attributes {stable_mosaic.version = 11 : i64} {
  func.func @_fused_mlp_kernel(%arg0: i32, %arg1: memref<2x16xf32, #tpu.memory_space<vmem>>, %arg2: memref<16x32xf32, #tpu.memory_space<vmem>>, %arg3: memref<1x32xf32, #tpu.memory_space<vmem>>, %arg4: memref<32x32xf32, #tpu.memory_space<vmem>>, %arg5: memref<1x32xf32, #tpu.memory_space<vmem>>, %arg6: memref<32x4xf32, #tpu.memory_space<vmem>>, %arg7: memref<1x4xf32, #tpu.memory_space<vmem>>, %arg8: memref<2x4xf32, #tpu.memory_space<vmem>>) attributes {dimension_semantics = [#tpu.dimension_semantics<parallel>], iteration_bounds = array<i64: 1>, scalar_prefetch = 0 : i64, scratch_operands = 0 : i64, tpu.core_type = #tpu.core_type<tc>, window_params = [{transform_indices = @transform_0, window_bounds = array<i64: 2, 16>}, {pipeline_mode = #tpu.pipeline_mode<synchronous>, transform_indices = @transform_1, window_bounds = array<i64: 16, 32>}, {pipeline_mode = #tpu.pipeline_mode<synchronous>, transform_indices = @transform_2, window_bounds = array<i64: 1, 32>}, {pipeline_mode = #tpu.pipeline_mode<synchronous>, transform_indices = @transform_3, window_bounds = array<i64: 32, 32>}, {pipeline_mode = #tpu.pipeline_mode<synchronous>, transform_indices = @transform_4, window_bounds = array<i64: 1, 32>}, {pipeline_mode = #tpu.pipeline_mode<synchronous>, transform_indices = @transform_5, window_bounds = array<i64: 32, 4>}, {pipeline_mode = #tpu.pipeline_mode<synchronous>, transform_indices = @transform_6, window_bounds = array<i64: 1, 4>}, {transform_indices = @transform_7, window_bounds = array<i64: 2, 4>}]} {
    %c0 = arith.constant 0 : index
    %c0_0 = arith.constant 0 : index
    %0 = vector.load %arg1[%c0, %c0_0] : memref<2x16xf32, #tpu.memory_space<vmem>>, vector<2x16xf32>
    %c0_1 = arith.constant 0 : index
    %c0_2 = arith.constant 0 : index
    %1 = vector.load %arg2[%c0_1, %c0_2] : memref<16x32xf32, #tpu.memory_space<vmem>>, vector<16x32xf32>
    %c0_3 = arith.constant 0 : index
    %c0_4 = arith.constant 0 : index
    %2 = vector.load %arg3[%c0_3, %c0_4] : memref<1x32xf32, #tpu.memory_space<vmem>>, vector<1x32xf32>
    %cst = arith.constant dense<0.000000e+00> : vector<2x32xf32>
    %3 = tpu.matmul %0, %1, %cst {dimension_numbers = #tpu.dot_dimension_numbers<[1], [0], [0], [1], [0, 0, 1, 1], [], []>} : vector<2x16xf32>, vector<16x32xf32>, vector<2x32xf32> -> vector<2x32xf32>
    %4 = vector.broadcast %2 : vector<1x32xf32> to vector<2x32xf32>
    %5 = arith.addf %3, %4 : vector<2x32xf32>
    %cst_5 = arith.constant 0.000000e+00 : f32
    %6 = vector.broadcast %cst_5 : f32 to vector<2x32xf32>
    %7 = arith.maximumf %5, %6 : vector<2x32xf32>
    %c0_6 = arith.constant 0 : index
    %c0_7 = arith.constant 0 : index
    %8 = vector.load %arg4[%c0_6, %c0_7] : memref<32x32xf32, #tpu.memory_space<vmem>>, vector<32x32xf32>
    %c0_8 = arith.constant 0 : index
    %c0_9 = arith.constant 0 : index
    %9 = vector.load %arg5[%c0_8, %c0_9] : memref<1x32xf32, #tpu.memory_space<vmem>>, vector<1x32xf32>
    %cst_10 = arith.constant dense<0.000000e+00> : vector<2x32xf32>
    %10 = tpu.matmul %7, %8, %cst_10 {dimension_numbers = #tpu.dot_dimension_numbers<[1], [0], [0], [1], [0, 0, 1, 1], [], []>} : vector<2x32xf32>, vector<32x32xf32>, vector<2x32xf32> -> vector<2x32xf32>
    %11 = vector.broadcast %9 : vector<1x32xf32> to vector<2x32xf32>
    %12 = arith.addf %10, %11 : vector<2x32xf32>
    %cst_11 = arith.constant 0.000000e+00 : f32
    %13 = vector.broadcast %cst_11 : f32 to vector<2x32xf32>
    %14 = arith.maximumf %12, %13 : vector<2x32xf32>
    %c0_12 = arith.constant 0 : index
    %c0_13 = arith.constant 0 : index
    %15 = vector.load %arg6[%c0_12, %c0_13] : memref<32x4xf32, #tpu.memory_space<vmem>>, vector<32x4xf32>
    %c0_14 = arith.constant 0 : index
    %c0_15 = arith.constant 0 : index
    %16 = vector.load %arg7[%c0_14, %c0_15] : memref<1x4xf32, #tpu.memory_space<vmem>>, vector<1x4xf32>
    %cst_16 = arith.constant dense<0.000000e+00> : vector<2x4xf32>
    %17 = tpu.matmul %14, %15, %cst_16 {dimension_numbers = #tpu.dot_dimension_numbers<[1], [0], [0], [1], [0, 0, 1, 1], [], []>} : vector<2x32xf32>, vector<32x4xf32>, vector<2x4xf32> -> vector<2x4xf32>
    %18 = vector.broadcast %16 : vector<1x4xf32> to vector<2x4xf32>
    %19 = arith.addf %17, %18 : vector<2x4xf32>
    %20 = math.tanh %19 : vector<2x4xf32>
    %c0_17 = arith.constant 0 : index
    %c0_18 = arith.constant 0 : index
    %21 = vector.load %arg8[%c0_17, %c0_18] : memref<2x4xf32, #tpu.memory_space<vmem>>, vector<2x4xf32>
    tpu.vector_store %arg8[%c0_17, %c0_18], %20 {strides = array<i32>} : memref<2x4xf32, #tpu.memory_space<vmem>>, vector<2x4xf32>,
    return
  }
  func.func @transform_0(%arg0: i32) -> (i32, i32) {
    %c0_i32 = arith.constant 0 : i32
    %c0_i32_0 = arith.constant 0 : i32
    return %arg0, %c0_i32 : i32, i32
  }
  func.func @transform_1(%arg0: i32) -> (i32, i32) {
    %c0_i32 = arith.constant 0 : i32
    %c0_i32_0 = arith.constant 0 : i32
    %c0_i32_1 = arith.constant 0 : i32
    return %c0_i32, %c0_i32_0 : i32, i32
  }
  func.func @transform_2(%arg0: i32) -> (i32, i32) {
    %c0_i32 = arith.constant 0 : i32
    %c0_i32_0 = arith.constant 0 : i32
    %c0_i32_1 = arith.constant 0 : i32
    return %c0_i32, %c0_i32_0 : i32, i32
  }
  func.func @transform_3(%arg0: i32) -> (i32, i32) {
    %c0_i32 = arith.constant 0 : i32
    %c0_i32_0 = arith.constant 0 : i32
    %c0_i32_1 = arith.constant 0 : i32
    return %c0_i32, %c0_i32_0 : i32, i32
  }
  func.func @transform_4(%arg0: i32) -> (i32, i32) {
    %c0_i32 = arith.constant 0 : i32
    %c0_i32_0 = arith.constant 0 : i32
    %c0_i32_1 = arith.constant 0 : i32
    return %c0_i32, %c0_i32_0 : i32, i32
  }
  func.func @transform_5(%arg0: i32) -> (i32, i32) {
    %c0_i32 = arith.constant 0 : i32
    %c0_i32_0 = arith.constant 0 : i32
    %c0_i32_1 = arith.constant 0 : i32
    return %c0_i32, %c0_i32_0 : i32, i32
  }
  func.func @transform_6(%arg0: i32) -> (i32, i32) {
    %c0_i32 = arith.constant 0 : i32
    %c0_i32_0 = arith.constant 0 : i32
    %c0_i32_1 = arith.constant 0 : i32
    return %c0_i32, %c0_i32_0 : i32, i32
  }
  func.func @transform_7(%arg0: i32) -> (i32, i32) {
    %c0_i32 = arith.constant 0 : i32
    %c0_i32_0 = arith.constant 0 : i32
    return %arg0, %c0_i32 : i32, i32
  }
}

</mosaic_0001>

<bundles_post_ra>
// kernel: tpu_custom_call.1
= control target key start
LH: loop header
LB: loop body
LE: loop exit
PB: predicated region body
PF: predicated region fallthrough
CT: control target
= control target key end

     0   :  { %12 = vsyncpa [#allocation3], 0  ;;  %s544_s0 = inlined_call_operand.vmem [shape: f32[2,16], index: 0, kind: input, shape index: {}]   ;;  %s545_s1 = inlined_call_operand.hbm [shape: f32[16,32], index: 1, kind: input, shape index: {}]   ;;  %s546_s2 = inlined_call_operand.vmem [shape: f32[1,32], index: 2, kind: input, shape index: {}]   ;;  %s547_s3 = inlined_call_operand.vmem [shape: f32[32,32], index: 3, kind: input, shape index: {}]   ;;  %s548_s4 = inlined_call_operand.vmem [shape: f32[1,32], index: 4, kind: input, shape index: {}]   ;;  %s549_s5 = inlined_call_operand.vmem [shape: f32[32,4], index: 5, kind: input, shape index: {}]   ;;  %s550_s6 = inlined_call_operand.vmem [shape: f32[1,4], index: 6, kind: input, shape index: {}]   ;;  %s551_s7 = inlined_call_operand.hbm [shape: f32[2,4], index: 7, kind: output, shape index: {}]  }
   0x1   :  { %13 = vsyncpa [#allocation4], 0  ;;  %s434_s24 = smov [#allocation2]   ;;  %s386_s28 = scalar_lea.hbm %s545_s1, 256 }
   0x2   :  { %s21_s25 = sshll.u32 %s434_s24, 4  ;;  %p387_p0 = scmp.ne.s32.totalorder %s545_s1, %s386_s28  ;;  %s22_s25 = int_to_ptr.vmem [resolvable:$true] %s21_s25 }
   0x3   :  { %p390_p1 = scmp.lt.u32.totalorder %s386_s28, %s545_s1 }
   0x5   :  { %p392_p2 = pnand %p390_p1, %p387_p0 }
   0x7   :  { %395 = shalt.err (!%p392_p2)
}
   0x8   :  { %s396_s10 = scalar_lea.vmem %s22_s25, 256  ;;  %p401_p4 = scmp.lt.s32.totalorder %s22_s25, %s22_s25 }
   0x9   :  { %p397_p3 = scmp.ne.s32.totalorder %s22_s25, %s396_s10  ;;  %p402_p5 = scmp.lt.s32.totalorder %s396_s10, %s396_s10 }
   0xb   :  { %p403_p6 = por %p402_p5, %p401_p4 }
   0xd   :  { %p404_p7 = pnand %p403_p6, %p397_p3 }
   0xf   :  { %407 = shalt.err (!%p404_p7)
}
  0x10   :  { %s435_s11 = smov 128   ;;  %s436_s12 = smov 8  }
  0x11   :  { %27 = dma.hbm_to_vmem [thread:$0]  %s545_s1, 256, %s22_s25, [#allocation3], %s435_s11, %s435_s11, %s436_s12  }
  0x12   :  { %430 = dma.done.wait [#allocation3], 256  }
  0x13   :  { %431 = vsyncadd [#allocation3], 4294967040  ;;  %v437_v0 = vmov 0.0|0.0   ;;  %vm438_vm0 = vmmov 0   ;;  %v439_v1 = vmov 0.0   ;;  %v42_v2 = vld [vmem:[#allocation2] sm:$0xff] }
  0x14   :  { %362 = vmatprep.subr.bf16.mxu0 %v437_v0  ;;  %337 = vmatprep.mubr.msk.f32.mxu0 %vm438_vm0, %v439_v1  ;;  %v43_v3 = vld [vmem:[#allocation2 + $0x8] sm:$0xff]  ;;  %v126_v5 = vld [vmem:[%s547_s3] sm:$0xff]  ;;  %vm51_vm1 = vcmask 130048   ;;  %v128_v9 = vld [vmem:[%s547_s3 + $0x10] sm:$0xff]  ;;  %vm137_vm2 = vcmask 261120   ;;  %vm297_vm3 = vcmask 25600  }
  0x15   :  { %365 = vmatprep.subr.bf16.mxu1 %v437_v0  ;;  %348 = vmatprep.mubr.msk.f32.mxu1 %vm438_vm0, %v439_v1  ;;  %v363_v4 = vpack.c.bf16 %v43_v3, %v42_v2  ;;  %v127_v6 = vld [vmem:[%s547_s3 + $0x8] sm:$0xff]  ;;  %v41_v8 = vld [vmem:[%s544_s0] sm:$0x3]  ;;  %v129_v10 = vld [vmem:[%s547_s3 + $0x18] sm:$0xff] }
  0x16   :  { %v366_v7 = vpack.c.bf16 %v127_v6, %v126_v5  ;;  %v369_v11 = vpack.c.bf16 %v129_v10, %v128_v9  ;;  %v212_v12 = vld [vmem:[%s549_s5] sm:$0xff]  ;;  %v213_v13 = vld [vmem:[%s549_s5 + $0x8] sm:$0xff]  ;;  %v214_v20 = vld [vmem:[%s549_s5 + $0x10] sm:$0xff] }
  0x17   :  { %364 = vmatpush3.bf16.msra.mxu0 %v363_v4  ;;  %v372_v14 = vpack.c.bf16 %v213_v13, %v212_v12  ;;  %v314_v15 = vld [vmem:[%s546_s2] ss:$0 sm:$0xff]  ;;  %v215_v21 = vld [vmem:[%s549_s5 + $0x18] sm:$0xff]  ;;  %s440_s5 = smov [#allocation5]  }
  0x18   :  { %367 = vmatpush3.bf16.msra.mxu1 %v366_v7  ;;  %371 = vmatprep.subr.bf16.mxu0 %v437_v0  ;;  %v375_v22 = vpack.c.bf16 %v215_v21, %v214_v20  ;;  %v316_v23 = vld [vmem:[%s548_s4] ss:$0 sm:$0xff]  ;;  %s305_s12 = sshll.u32 %s440_s5, 4  ;;  %s306_s12 = int_to_ptr.vmem [resolvable:$true] %s305_s12 }
  0x19   :  { %368 = vmatprep.subr.bf16.mxu1 %v437_v0  ;;  %v318_v28 = vld [vmem:[%s550_s6] ss:$0 sm:$0xff]  ;;  %s408_s4 = scalar_lea.vmem %s306_s12, 32  ;;  %p413_p9 = scmp.lt.s32.totalorder %s306_s12, %s306_s12 }
  0x1a   :  { %338 = vmatmul.mubr.msk.f32.vlgmr.msra.gmra.mrb[0].mxu0 %vm51_vm1, %v41_v8  ;;  %p409_p8 = scmp.ne.s32.totalorder %s306_s12, %s408_s4  ;;  %p414_p10 = scmp.lt.s32.totalorder %s408_s4, %s408_s4 }
  0x1b   :  { %359 = vmatprep.mubr.msk.f32.mxu0 %vm438_vm0, %v439_v1  ;;  %373 = vmatpush3.bf16.msra.mxu0 %v372_v14 }
  0x1c   :  { %370 = vmatpush3.bf16.msra.mxu1 %v369_v11  ;;  %374 = vmatprep.subr.bf16.mxu0 %v437_v0  ;;  %p415_p11 = por %p414_p10, %p413_p9 }
  0x1e   :  { %p416_p12 = pnand %p415_p11, %p409_p8 }
  0x1f   :  { %376 = vmatpush3.bf16.msra.mxu0 %v375_v22 }
  0xed   :  { %v121_v16 = vpop.f32.mrb[0].mxu0 }
  0xee   :  { %v122_v17 = vadd.f32 %v314_v15, %v121_v16  ;;  %v339_v18 = vpop.f32.mrb[1].mxu0 }
  0xf0   :  { %v125_v19 = vmax.f32 %v122_v17, 0.0 }
  0xf2   :  { %349 = vmatmul.mubr.msk.f32.vlgmr.msra.gmra.mrb[0].mxu1 %vm137_vm2, %v125_v19 }
 0x1c5   :  { %v207_v24 = vpop.f32.mrb[0].mxu1 }
 0x1c6   :  { %v208_v25 = vadd.f32 %v316_v23, %v207_v24  ;;  %v350_v26 = vpop.f32.mrb[1].mxu1 }
 0x1c8   :  { %v211_v27 = vmax.f32 %v208_v25, 0.0 }
 0x1ca   :  { %360 = vmatmul.mubr.msk.f32.vlgmr.msra.gmra.mrb[2].mxu0 %vm137_vm2, %v211_v27 }
 0x29d   :  { %v292_v29 = vpop.f32.mrb[2].mxu0 }
 0x29e   :  { %v293_v30 = vadd.f32 %v318_v28, %v292_v29  ;;  %v361_v31 = vpop.f32.mrb[3].mxu0 }
 0x2a0   :  { %384 = vtanh.f32 %v293_v30 }
 0x2aa   :  { %v385_v32 = vpop.eup %384 }
 0x2ab   :  { %298 = vst.msk [vmem:[#allocation5] sm:$0x3] %vm297_vm3, %v385_v32 }
 0x2ac   :  { %419 = shalt.err (!%p416_p12)
}
 0x2ad   :  { %s420_s6 = scalar_lea.hbm %s551_s7, 32 }
 0x2ae   :  { %p421_p13 = scmp.ne.s32.totalorder %s551_s7, %s420_s6  ;;  %p424_p0 = scmp.lt.u32.totalorder %s420_s6, %s551_s7 }
 0x2b0   :  { %p426_p1 = pnand %p424_p0, %p421_p13 }
 0x2b2   :  { %429 = shalt.err (!%p426_p1)
}
 0x2b3   :  { %308 = dma.vmem_to_hbm [thread:$0]  %s306_s12, 32, %s551_s7, [#allocation4]  }
 0x2b4   :  { %432 = dma.done.wait [#allocation4], 32  }
 0x2b5   :  { %433 = vsyncadd [#allocation4], 4294967264 }
 0x2b6   :  { %312 = vsyncpa [#allocation3], 1 }
 0x2b7   :  { %313 = vsyncpa [#allocation4], 1 }

</bundles_post_ra>
